<compile_context>
chip_gen: v5e
topology: v5e:2x2
jax: 0.10.0
libtpu: 0.0.40
codegen_flags: <defaults>
</compile_context>

<pallas_src>
import jax
import jax.numpy as jnp
from jax.experimental import pallas as pl
from jax.experimental.pallas import tpu as pltpu


def mlp_kernel(x_ref, w1_ref, b1_ref, w2_ref, b2_ref, o_ref):
    """One batch tile of relu(x @ W1 + b1) @ W2 + b2 (single pass, no scratch)."""
    # Cast x to bf16 in-kernel (VPU) and run both matmuls on the MXU with f32
    # accumulation; bias adds and ReLU stay in f32 on the VPU.
    x = x_ref[...].astype(jnp.bfloat16)
    h = jnp.dot(x, w1_ref[...], preferred_element_type=jnp.float32)
    h = jnp.maximum(h + b1_ref[...], 0.0)
    out = jnp.dot(h.astype(jnp.bfloat16), w2_ref[...],
                  preferred_element_type=jnp.float32)
    o_ref[...] = (out + b2_ref[...]).astype(o_ref.dtype)


def _round_up(x, m):
    return (x + m - 1) // m * m


def _pick_batch_tiling(batch):
    """Returns (tile_m, m_pad). >= 2 tiles once batch is big enough (v7x)."""
    if batch < 64:
        return batch, batch                      # single tile; nothing to split
    if batch <= 1024:
        tile_m = _round_up(-(-batch // 2), 8)    # two tiles, 8-row aligned
    else:
        tile_m = 512                             # big tiles; ~3.2 MB x-blocks
    return tile_m, _round_up(batch, tile_m)


def prepare_params(w1, b1, w2, b2):
    """One-time weight staging (cast/pad) hoisted out of the per-call path.

    w1: (d_in, d_hidden), b1: (1, d_hidden) or (d_hidden,)
    w2: (d_hidden, d_out), b2: (1, d_out) or (d_out,)
    """
    d_hidden = w1.shape[1]
    d_out = w2.shape[1]
    d_out_p = _round_up(d_out, 128)              # lane-dense output / W2 / b2
    w1_b = w1.astype(jnp.bfloat16)
    b1_f = jnp.reshape(b1, (1, d_hidden)).astype(jnp.float32)
    w2_b = jnp.pad(w2.astype(jnp.bfloat16), ((0, 0), (0, d_out_p - d_out)))
    b2_f = jnp.pad(jnp.reshape(b2, (1, d_out)).astype(jnp.float32),
                   ((0, 0), (0, d_out_p - d_out)))
    return (w1_b, b1_f, w2_b, b2_f, d_out)


def my_sequential_forward(x, params):
    """Forward of MySequential(Linear(d_in,d_h), ReLU(), Linear(d_h,d_out))."""
    w1_b, b1_f, w2_b, b2_f, d_out = params
    batch, d_in = x.shape
    d_hidden = w1_b.shape[1]
    d_out_p = w2_b.shape[1]

    tile_m, m_pad = _pick_batch_tiling(batch)
    x_p = x if m_pad == batch else jnp.pad(x, ((0, m_pad - batch), (0, 0)))

    out = pl.pallas_call(
        mlp_kernel,
        out_shape=jax.ShapeDtypeStruct((m_pad, d_out_p), x.dtype),
        grid_spec=pltpu.PrefetchScalarGridSpec(
            num_scalar_prefetch=0,
            grid=(m_pad // tile_m,),                              # batch tiles
            in_specs=[
                pl.BlockSpec((tile_m, d_in), lambda m: (m, 0)),   # x (full K)
                pl.BlockSpec((d_in, d_hidden), lambda m: (0, 0)),  # W1 resident
                pl.BlockSpec((1, d_hidden), lambda m: (0, 0)),     # b1 resident
                pl.BlockSpec((d_hidden, d_out_p), lambda m: (0, 0)),  # W2 resident
                pl.BlockSpec((1, d_out_p), lambda m: (0, 0)),      # b2 resident
            ],
            out_specs=pl.BlockSpec((tile_m, d_out_p), lambda m: (m, 0)),
        ),
        compiler_params=pltpu.CompilerParams(
            dimension_semantics=("parallel",)),
    )(x_p, w1_b, b1_f, w2_b, b2_f)

    # Slice off padded batch rows and padded output lanes (pure view-level).
    return out[:batch, :d_out]


def reference_forward(x, w1, b1, w2, b2):
    """f32 reference mirroring the kernel's bf16-operand numerics."""
    xb = x.astype(jnp.bfloat16).astype(jnp.float32)
    w1b = w1.astype(jnp.bfloat16).astype(jnp.float32)
    w2b = w2.astype(jnp.bfloat16).astype(jnp.float32)
    h = jnp.maximum(xb @ w1b + jnp.reshape(b1, (1, -1)), 0.0)
    h = h.astype(jnp.bfloat16).astype(jnp.float32)
    return h @ w2b + jnp.reshape(b2, (1, -1))


if __name__ == "__main__":
    # Shapes from the chapter: X = torch.rand(2, 784);
    # net = MySequential(Linear(784, 256), ReLU(), Linear(256, 10))
    batch, d_in, d_hidden, d_out = 2, 784, 256, 10

    key = jax.random.PRNGKey(0)
    kx, kw1, kb1, kw2, kb2 = jax.random.split(key, 5)

    x = jax.random.uniform(kx, (batch, d_in), dtype=jnp.float32)
    # PyTorch Linear weight is (out, in); we store (in, out) for x @ W.
    w1 = jax.random.normal(kw1, (d_in, d_hidden), dtype=jnp.float32) * 0.02
    b1 = jax.random.normal(kb1, (1, d_hidden), dtype=jnp.float32) * 0.02
    w2 = jax.random.normal(kw2, (d_hidden, d_out), dtype=jnp.float32) * 0.02
    b2 = jax.random.normal(kb2, (1, d_out), dtype=jnp.float32) * 0.02

    params = prepare_params(w1, b1, w2, b2)          # one-time weight staging
    out = jax.block_until_ready(my_sequential_forward(x, params))

    ref = reference_forward(x, w1, b1, w2, b2)
    assert out.shape == (batch, d_out)
    assert jnp.allclose(out, ref, atol=2e-3, rtol=2e-3), (
        f"max abs err {float(jnp.max(jnp.abs(out - ref)))}")

    print("KERNEL_OK")
</pallas_src>

<mosaic_0001>
module attributes {stable_mosaic.version = 11 : i64} {
  func.func @mlp_kernel(%arg0: i32, %arg1: memref<2x784xf32, #tpu.memory_space<vmem>>, %arg2: memref<784x256xbf16, #tpu.memory_space<vmem>>, %arg3: memref<1x256xf32, #tpu.memory_space<vmem>>, %arg4: memref<256x128xbf16, #tpu.memory_space<vmem>>, %arg5: memref<1x128xf32, #tpu.memory_space<vmem>>, %arg6: memref<2x128xf32, #tpu.memory_space<vmem>>) attributes {dimension_semantics = [#tpu.dimension_semantics<parallel>], iteration_bounds = array<i64: 1>, scalar_prefetch = 0 : i64, scratch_operands = 0 : i64, tpu.core_type = #tpu.core_type<tc>, window_params = [{transform_indices = @transform_0, window_bounds = array<i64: 2, 784>}, {pipeline_mode = #tpu.pipeline_mode<synchronous>, transform_indices = @transform_1, window_bounds = array<i64: 784, 256>}, {pipeline_mode = #tpu.pipeline_mode<synchronous>, transform_indices = @transform_2, window_bounds = array<i64: 1, 256>}, {pipeline_mode = #tpu.pipeline_mode<synchronous>, transform_indices = @transform_3, window_bounds = array<i64: 256, 128>}, {pipeline_mode = #tpu.pipeline_mode<synchronous>, transform_indices = @transform_4, window_bounds = array<i64: 1, 128>}, {transform_indices = @transform_5, window_bounds = array<i64: 2, 128>}]} {
    %c0 = arith.constant 0 : index
    %c0_0 = arith.constant 0 : index
    %0 = vector.load %arg1[%c0, %c0_0] : memref<2x784xf32, #tpu.memory_space<vmem>>, vector<2x784xf32>
    %1 = arith.truncf %0 : vector<2x784xf32> to vector<2x784xbf16>
    %c0_1 = arith.constant 0 : index
    %c0_2 = arith.constant 0 : index
    %2 = vector.load %arg2[%c0_1, %c0_2] : memref<784x256xbf16, #tpu.memory_space<vmem>>, vector<784x256xbf16>
    %cst = arith.constant dense<0.000000e+00> : vector<2x256xf32>
    %3 = tpu.matmul %1, %2, %cst {dimension_numbers = #tpu.dot_dimension_numbers<[1], [0], [0], [1], [0, 0, 1, 1], [], []>} : vector<2x784xbf16>, vector<784x256xbf16>, vector<2x256xf32> -> vector<2x256xf32>
    %c0_3 = arith.constant 0 : index
    %c0_4 = arith.constant 0 : index
    %4 = vector.load %arg3[%c0_3, %c0_4] : memref<1x256xf32, #tpu.memory_space<vmem>>, vector<1x256xf32>
    %5 = vector.broadcast %4 : vector<1x256xf32> to vector<2x256xf32>
    %6 = arith.addf %3, %5 : vector<2x256xf32>
    %cst_5 = arith.constant 0.000000e+00 : f32
    %7 = vector.broadcast %cst_5 : f32 to vector<2x256xf32>
    %8 = arith.maximumf %6, %7 : vector<2x256xf32>
    %9 = arith.truncf %8 : vector<2x256xf32> to vector<2x256xbf16>
    %c0_6 = arith.constant 0 : index
    %c0_7 = arith.constant 0 : index
    %10 = vector.load %arg4[%c0_6, %c0_7] : memref<256x128xbf16, #tpu.memory_space<vmem>>, vector<256x128xbf16>
    %cst_8 = arith.constant dense<0.000000e+00> : vector<2x128xf32>
    %11 = tpu.matmul %9, %10, %cst_8 {dimension_numbers = #tpu.dot_dimension_numbers<[1], [0], [0], [1], [0, 0, 1, 1], [], []>} : vector<2x256xbf16>, vector<256x128xbf16>, vector<2x128xf32> -> vector<2x128xf32>
    %c0_9 = arith.constant 0 : index
    %c0_10 = arith.constant 0 : index
    %12 = vector.load %arg5[%c0_9, %c0_10] : memref<1x128xf32, #tpu.memory_space<vmem>>, vector<1x128xf32>
    %13 = vector.broadcast %12 : vector<1x128xf32> to vector<2x128xf32>
    %14 = arith.addf %11, %13 : vector<2x128xf32>
    %c0_11 = arith.constant 0 : index
    %c0_12 = arith.constant 0 : index
    %15 = vector.load %arg6[%c0_11, %c0_12] : memref<2x128xf32, #tpu.memory_space<vmem>>, vector<2x128xf32>
    tpu.vector_store %arg6[%c0_11, %c0_12], %14 {strides = array<i32>} : memref<2x128xf32, #tpu.memory_space<vmem>>, vector<2x128xf32>,
    return
  }
  func.func @transform_0(%arg0: i32) -> (i32, i32) {
    %c0_i32 = arith.constant 0 : i32
    %c0_i32_0 = arith.constant 0 : i32
    return %arg0, %c0_i32 : i32, i32
  }
  func.func @transform_1(%arg0: i32) -> (i32, i32) {
    %c0_i32 = arith.constant 0 : i32
    %c0_i32_0 = arith.constant 0 : i32
    %c0_i32_1 = arith.constant 0 : i32
    return %c0_i32, %c0_i32_0 : i32, i32
  }
  func.func @transform_2(%arg0: i32) -> (i32, i32) {
    %c0_i32 = arith.constant 0 : i32
    %c0_i32_0 = arith.constant 0 : i32
    %c0_i32_1 = arith.constant 0 : i32
    return %c0_i32, %c0_i32_0 : i32, i32
  }
  func.func @transform_3(%arg0: i32) -> (i32, i32) {
    %c0_i32 = arith.constant 0 : i32
    %c0_i32_0 = arith.constant 0 : i32
    %c0_i32_1 = arith.constant 0 : i32
    return %c0_i32, %c0_i32_0 : i32, i32
  }
  func.func @transform_4(%arg0: i32) -> (i32, i32) {
    %c0_i32 = arith.constant 0 : i32
    %c0_i32_0 = arith.constant 0 : i32
    %c0_i32_1 = arith.constant 0 : i32
    return %c0_i32, %c0_i32_0 : i32, i32
  }
  func.func @transform_5(%arg0: i32) -> (i32, i32) {
    %c0_i32 = arith.constant 0 : i32
    %c0_i32_0 = arith.constant 0 : i32
    return %arg0, %c0_i32 : i32, i32
  }
}

</mosaic_0001>

<bundles_post_ra>
// kernel: tpu_custom_call.1
= control target key start
LH: loop header
LB: loop body
LE: loop exit
PB: predicated region body
PF: predicated region fallthrough
CT: control target
= control target key end

     0   :  { %10 = vsyncpa [#allocation3], 0  ;;  %s1868_s0 = inlined_call_operand.hbm [shape: f32[2,784], index: 0, kind: input, shape index: {}]   ;;  %s1869_s1 = inlined_call_operand.hbm [shape: bf16[784,256], index: 1, kind: input, shape index: {}]   ;;  %s1870_s2 = inlined_call_operand.hbm [shape: f32[1,256], index: 2, kind: input, shape index: {}]   ;;  %s1871_s3 = inlined_call_operand.hbm [shape: bf16[256,128], index: 3, kind: input, shape index: {}]   ;;  %s1872_s4 = inlined_call_operand.vmem [shape: f32[1,128], index: 4, kind: input, shape index: {}]   ;;  %s1873_s5 = inlined_call_operand.hbm [shape: f32[2,128], index: 5, kind: output, shape index: {}]  }
   0x1   :  { %11 = vsyncpa [#allocation6], 0 }
   0x2   :  { %12 = vsyncpa [#allocation9], 0  ;;  %s29_s20 = sshll.u32 %s1869_s1, 4  ;;  %s30_s20 = int_to_ptr.hbm [resolvable:$true] %s29_s20 }
   0x3   :  { %13 = vsyncpa [#allocation4], 0  ;;  %s1781_s21 = smov [#allocation5]   ;;  %s19_s25 = sshll.u32 %s1868_s0, 4  ;;  %s20_s25 = int_to_ptr.hbm [resolvable:$true] %s19_s25 }
   0x4   :  { %s31_s22 = sshll.u32 %s1781_s21, 4  ;;  %s1782_s26 = smov 128   ;;  %s32_s22 = int_to_ptr.vmem [resolvable:$true] %s31_s22 }
   0x5   :  { %s1783_s27 = smov 8   ;;  %s1784_s28 = smov [#allocation2]  }
   0x6   :  { %37 = dma.hbm_to_vmem [thread:$0]  %s30_s20, 12544, %s32_s22, [#allocation6], %s1782_s26, %s1782_s26, %s1783_s27  }
   0x7   :  { %s21_s29 = sshll.u32 %s1784_s28, 4  ;;  %s43_s7 = sshll.u32 %s1870_s2, 4  ;;  %s22_s29 = int_to_ptr.vmem [resolvable:$true] %s21_s29  ;;  %s44_s7 = int_to_ptr.hbm [resolvable:$true] %s43_s7 }
   0x8   :  { %24 = dma.hbm_to_vmem [thread:$0]  %s20_s25, 224, %s22_s29, [#allocation3]  }
   0x9   :  { %s53_s9 = sshll.u32 %s1871_s3, 4  ;;  %s1785_s10 = smov [#allocation7]   ;;  %s54_s9 = int_to_ptr.hbm [resolvable:$true] %s53_s9 }
   0xa   :  { %s45_s11 = sshll.u32 %s1785_s10, 4  ;;  %s1786_s0 = smov [#allocation8]   ;;  %s46_s11 = int_to_ptr.vmem [resolvable:$true] %s45_s11 }
   0xb   :  { %48 = dma.hbm_to_vmem [thread:$0]  %s44_s7, 32, %s46_s11, [#allocation6]  }
   0xc   :  { %s55_s12 = sshll.u32 %s1786_s0, 4  ;;  %s1787_s13 = smov 64   ;;  %s56_s12 = int_to_ptr.vmem [resolvable:$true] %s55_s12 }
   0xd   :  { %s1788_s14 = smov 4  }
   0xe   :  { %61 = dma.hbm_to_vmem [thread:$0]  %s54_s9, 2048, %s56_s12, [#allocation9], %s1787_s13, %s1787_s13, %s1788_s14  }
   0xf   :  { %1773 = dma.done.wait [#allocation3], 224  }
  0x10   :  { %1774 = vsyncadd [#allocation3], 4294967072 }
  0x11   :  { %1775 = dma.done.wait [#allocation6], 12576  }
  0x12   :  { %1776 = vsyncadd [#allocation6], 4294954720 }
  0x13   :  { %1777 = dma.done.wait [#allocation9], 2048  }
  0x14   :  { %1778 = vsyncadd [#allocation9], 4294965248  ;;  %v1129_v0 = vld [vmem:[#allocation5 + $0x70] sm:$0xf]  ;;  %v1544_v1 = vld [vmem:[#allocation5 + $0x74] sm:$0xf0] }
  0x15   :  { %v1257_v2 = vld [vmem:[#allocation5 + $0x170] sm:$0xf]  ;;  %v1130_v3 = vor.u32 %v1544_v1, %v1129_v0  ;;  %v1576_v4 = vld [vmem:[#allocation5 + $0x174] sm:$0xf0]  ;;  %v1121_v11 = vld [vmem:[#allocation5 + $0x60] sm:$0xf] }
  0x16   :  { %v1321_v5 = vld [vmem:[#allocation5 + $0x1f0] sm:$0xf]  ;;  %v1592_v6 = vld [vmem:[#allocation5 + $0x1f4] sm:$0xf0]  ;;  %v1258_v7 = vor.u32 %v1576_v4, %v1257_v2  ;;  %v1542_v13 = vld [vmem:[#allocation5 + $0x64] sm:$0xf0] }
  0x17   :  { %v1322_v8 = vor.u32 %v1592_v6, %v1321_v5  ;;  %v1193_v9 = vld [vmem:[#allocation5 + $0xf0] sm:$0xf]  ;;  %v1560_v10 = vld [vmem:[#allocation5 + $0xf4] sm:$0xf0]  ;;  %707 = vmatpush.bf16.msra.mxu0 %v1130_v3  ;;  %v1249_v14 = vld [vmem:[#allocation5 + $0x160] sm:$0xf]  ;;  %v1122_v16 = vor.u32 %v1542_v13, %v1121_v11 }
  0x18   :  { %v1194_v12 = vor.u32 %v1560_v10, %v1193_v9  ;;  %v1574_v15 = vld [vmem:[#allocation5 + $0x164] sm:$0xf0]  ;;  %733 = vmatpush.bf16.msra.mxu2 %v1258_v7  ;;  %v1313_v18 = vld [vmem:[#allocation5 + $0x1e0] sm:$0xf]  ;;  %v1113_v23 = vld [vmem:[#allocation5 + $0x50] sm:$0xf] }
  0x19   :  { %746 = vmatpush.bf16.msra.mxu3 %v1322_v8  ;;  %v1250_v17 = vor.u32 %v1574_v15, %v1249_v14  ;;  %v1590_v19 = vld [vmem:[#allocation5 + $0x1e4] sm:$0xf0]  ;;  %v1185_v20 = vld [vmem:[#allocation5 + $0xe0] sm:$0xf]  ;;  %v1540_v24 = vld [vmem:[#allocation5 + $0x54] sm:$0xf0] }
  0x1a   :  { %720 = vmatpush.bf16.msra.mxu1 %v1194_v12  ;;  %v1314_v21 = vor.u32 %v1590_v19, %v1313_v18  ;;  %v1558_v22 = vld [vmem:[#allocation5 + $0xe4] sm:$0xf0]  ;;  %v1241_v26 = vld [vmem:[#allocation5 + $0x150] sm:$0xf]  ;;  %v1572_v27 = vld [vmem:[#allocation5 + $0x154] sm:$0xf0]  ;;  %v1114_v29 = vor.u32 %v1540_v24, %v1113_v23 }
  0x1b   :  { %v1186_v25 = vor.u32 %v1558_v22, %v1185_v20  ;;  %v1305_v28 = vld [vmem:[#allocation5 + $0x1d0] sm:$0xf]  ;;  %708 = vmatpush.bf16.msra.mxu0 %v1122_v16  ;;  %v1588_v30 = vld [vmem:[#allocation5 + $0x1d4] sm:$0xf0]  ;;  %v1242_v33 = vor.u32 %v1572_v27, %v1241_v26  ;;  %v1105_v35 = vld [vmem:[#allocation5 + $0x40] sm:$0xf] }
  0x1c   :  { %v1177_v31 = vld [vmem:[#allocation5 + $0xd0] sm:$0xf]  ;;  %v1556_v32 = vld [vmem:[#allocation5 + $0xd4] sm:$0xf0]  ;;  %734 = vmatpush.bf16.msra.mxu2 %v1250_v17  ;;  %v1306_v34 = vor.u32 %v1588_v30, %v1305_v28  ;;  %v1538_v36 = vld [vmem:[#allocation5 + $0x44] sm:$0xf0] }
  0x1d   :  { %747 = vmatpush.bf16.msra.mxu3 %v1314_v21  ;;  %v1233_v37 = vld [vmem:[#allocation5 + $0x140] sm:$0xf]  ;;  %v1178_v38 = vor.u32 %v1556_v32, %v1177_v31  ;;  %v1570_v39 = vld [vmem:[#allocation5 + $0x144] sm:$0xf0]  ;;  %v1106_v44 = vor.u32 %v1538_v36, %v1105_v35  ;;  %v1097_v47 = vld [vmem:[#allocation5 + $0x30] sm:$0xf] }
  0x1e   :  { %721 = vmatpush.bf16.msra.mxu1 %v1186_v25  ;;  %v1297_v40 = vld [vmem:[#allocation5 + $0x1c0] sm:$0xf]  ;;  %v1586_v41 = vld [vmem:[#allocation5 + $0x1c4] sm:$0xf0]  ;;  %v1234_v45 = vor.u32 %v1570_v39, %v1233_v37  ;;  %v1536_v48 = vld [vmem:[#allocation5 + $0x34] sm:$0xf0] }
  0x1f   :  { %v1169_v42 = vld [vmem:[#allocation5 + $0xc0] sm:$0xf]  ;;  %v1554_v43 = vld [vmem:[#allocation5 + $0xc4] sm:$0xf0]  ;;  %709 = vmatpush.bf16.msra.mxu0 %v1114_v29  ;;  %v1298_v46 = vor.u32 %v1586_v41, %v1297_v40  ;;  %v1225_v49 = vld [vmem:[#allocation5 + $0x130] sm:$0xf]  ;;  %v1098_v56 = vor.u32 %v1536_v48, %v1097_v47 }
  0x20   :  { %735 = vmatpush.bf16.msra.mxu2 %v1242_v33  ;;  %v1170_v50 = vor.u32 %v1554_v43, %v1169_v42  ;;  %v1568_v51 = vld [vmem:[#allocation5 + $0x134] sm:$0xf0]  ;;  %v1289_v52 = vld [vmem:[#allocation5 + $0x1b0] sm:$0xf]  ;;  %v1089_v59 = vld [vmem:[#allocation5 + $0x20] sm:$0xf] }
  0x21   :  { %748 = vmatpush.bf16.msra.mxu3 %v1306_v34  ;;  %v1584_v53 = vld [vmem:[#allocation5 + $0x1b4] sm:$0xf0]  ;;  %v1161_v54 = vld [vmem:[#allocation5 + $0xb0] sm:$0xf]  ;;  %v1226_v57 = vor.u32 %v1568_v51, %v1225_v49  ;;  %v1534_v60 = vld [vmem:[#allocation5 + $0x24] sm:$0xf0] }
  0x22   :  { %722 = vmatpush.bf16.msra.mxu1 %v1178_v38  ;;  %v1552_v55 = vld [vmem:[#allocation5 + $0xb4] sm:$0xf0]  ;;  %v1290_v58 = vor.u32 %v1584_v53, %v1289_v52  ;;  %v1217_v61 = vld [vmem:[#allocation5 + $0x120] sm:$0xf]  ;;  %v1566_v63 = vld [vmem:[#allocation5 + $0x124] sm:$0xf0]  ;;  %v1090_v4 = vor.u32 %v1534_v60, %v1089_v59 }
  0x23   :  { %710 = vmatpush.bf16.msra.mxu0 %v1106_v44  ;;  %v1162_v62 = vor.u32 %v1552_v55, %v1161_v54  ;;  %v1281_v0 = vld [vmem:[#allocation5 + $0x1a0] sm:$0xf]  ;;  %v1582_v1 = vld [vmem:[#allocation5 + $0x1a4] sm:$0xf0]  ;;  %v1081_v5 = vld [vmem:[#allocation5 + $0x10] sm:$0xf]  ;;  %v1218_v7 = vor.u32 %v1566_v63, %v1217_v61 }
  0x24   :  { %736 = vmatpush.bf16.msra.mxu2 %v1234_v45  ;;  %v1153_v2 = vld [vmem:[#allocation5 + $0xa0] sm:$0xf]  ;;  %v1550_v3 = vld [vmem:[#allocation5 + $0xa4] sm:$0xf0]  ;;  %v1532_v6 = vld [vmem:[#allocation5 + $0x14] sm:$0xf0]  ;;  %v1282_v8 = vor.u32 %v1582_v1, %v1281_v0 }
  0x25   :  { %749 = vmatpush.bf16.msra.mxu3 %v1298_v46  ;;  %v1209_v9 = vld [vmem:[#allocation5 + $0x110] sm:$0xf]  ;;  %v1564_v10 = vld [vmem:[#allocation5 + $0x114] sm:$0xf0]  ;;  %v1154_v12 = vor.u32 %v1550_v3, %v1153_v2  ;;  %v1073_v16 = vld [vmem:[#allocation5] sm:$0xf]  ;;  %v1082_v19 = vor.u32 %v1532_v6, %v1081_v5 }
  0x26   :  { %723 = vmatpush.bf16.msra.mxu1 %v1170_v50  ;;  %v1273_v11 = vld [vmem:[#allocation5 + $0x190] sm:$0xf]  ;;  %v1580_v13 = vld [vmem:[#allocation5 + $0x194] sm:$0xf0]  ;;  %v1530_v17 = vld [vmem:[#allocation5 + $0x4] sm:$0xf0]  ;;  %v1210_v22 = vor.u32 %v1564_v10, %v1209_v9 }
  0x27   :  { %711 = vmatpush.bf16.msra.mxu0 %v1098_v56  ;;  %v1145_v14 = vld [vmem:[#allocation5 + $0x90] sm:$0xf]  ;;  %v1548_v15 = vld [vmem:[#allocation5 + $0x94] sm:$0xf0]  ;;  %v1201_v20 = vld [vmem:[#allocation5 + $0x100] sm:$0xf]  ;;  %v1274_v23 = vor.u32 %v1580_v13, %v1273_v11  ;;  %v1074_v34 = vor.u32 %v1530_v17, %v1073_v16 }
  0x28   :  { %737 = vmatpush.bf16.msra.mxu2 %v1226_v57  ;;  %v81_v18 = vld [vmem:[#allocation2] sm:$0xff]  ;;  %v1562_v21 = vld [vmem:[#allocation5 + $0x104] sm:$0xf0]  ;;  %v1265_v24 = vld [vmem:[#allocation5 + $0x180] sm:$0xf]  ;;  %v1146_v27 = vor.u32 %v1548_v15, %v1145_v14  ;;  %vm703_vm0 = vcmask 130048  }
  0x29   :  { %750 = vmatpush.bf16.msra.mxu3 %v1290_v58  ;;  %85 = vst [vmem:[#allocation1] ss:$4 sm:$0xff] %v81_v18  ;;  %v1578_v25 = vld [vmem:[#allocation5 + $0x184] sm:$0xf0]  ;;  %v1385_v26 = vld [vmem:[#allocation5 + $0x270] sm:$0xf]  ;;  %v1202_v38 = vor.u32 %v1562_v21, %v1201_v20 }
  0x2a   :  { %724 = vmatpush.bf16.msra.mxu1 %v1162_v62  ;;  %v1608_v28 = vld [vmem:[#allocation5 + $0x274] sm:$0xf0]  ;;  %v1543_v29 = vld [vmem:[#allocation5 + $0x74] sm:$0xf]  ;;  %v1131_v30 = vld [vmem:[#allocation5 + $0x78] sm:$0xf0]  ;;  %v1266_v39 = vor.u32 %v1578_v25, %v1265_v24 }
  0x2b   :  { %712 = vmatpush.bf16.msra.mxu0 %v1090_v4  ;;  %v1137_v31 = vld [vmem:[#allocation5 + $0x80] sm:$0xf]  ;;  %v1546_v32 = vld [vmem:[#allocation5 + $0x84] sm:$0xf0]  ;;  %v1449_v33 = vld [vmem:[#allocation5 + $0x2f0] sm:$0xf]  ;;  %v1386_v43 = vor.u32 %v1608_v28, %v1385_v26  ;;  %v1134_v44 = vor.u32 %v1543_v29, %v1131_v30 }
  0x2c   :  { %738 = vmatpush.bf16.msra.mxu2 %v1218_v7  ;;  %v1624_v35 = vld [vmem:[#allocation5 + $0x2f4] sm:$0xf0]  ;;  %v1457_v36 = vld [vmem:[#allocation5 + $0x300] sm:$0xf]  ;;  %v1626_v37 = vld [vmem:[#allocation5 + $0x304] sm:$0xf0]  ;;  %v1138_v48 = vor.u32 %v1546_v32, %v1137_v31 }
  0x2d   :  { %751 = vmatpush.bf16.msra.mxu3 %v1282_v8  ;;  %v1559_v40 = vld [vmem:[#allocation5 + $0xf4] sm:$0xf]  ;;  %v1195_v41 = vld [vmem:[#allocation5 + $0xf8] sm:$0xf0]  ;;  %v1377_v42 = vld [vmem:[#allocation5 + $0x260] sm:$0xf]  ;;  %v1458_v50 = vor.u32 %v1626_v37, %v1457_v36  ;;  %v1450_v53 = vor.u32 %v1624_v35, %v1449_v33 }
  0x2e   :  { %725 = vmatpush.bf16.msra.mxu1 %v1154_v12  ;;  %v1606_v45 = vld [vmem:[#allocation5 + $0x264] sm:$0xf0]  ;;  %v1541_v46 = vld [vmem:[#allocation5 + $0x64] sm:$0xf]  ;;  %v1123_v47 = vld [vmem:[#allocation5 + $0x68] sm:$0xf0]  ;;  %v1198_v56 = vor.u32 %v1559_v40, %v1195_v41 }
  0x2f   :  { %713 = vmatpush.bf16.msra.mxu0 %v1082_v19  ;;  %v1441_v54 = vld [vmem:[#allocation5 + $0x2e0] sm:$0xf]  ;;  %v1622_v57 = vld [vmem:[#allocation5 + $0x2e4] sm:$0xf0]  ;;  %v1378_v60 = vor.u32 %v1606_v45, %v1377_v42  ;;  %v1126_v61 = vor.u32 %v1541_v46, %v1123_v47  ;;  %v1557_v62 = vld [vmem:[#allocation5 + $0xe4] sm:$0xf] }
  0x30   :  { %739 = vmatpush.bf16.msra.mxu2 %v1210_v22  ;;  %v90_v49 = vld.sshfl [vmem:[#allocation1 + $0x10] sm:$0xff pattern:$0x73625140]  ;;  %v88_v51 = vld.sshfl [vmem:[#allocation1] sm:$0xff pattern:$0x73625140]  ;;  %v1442_v6 = vor.u32 %v1622_v57, %v1441_v54 }
  0x31   :  { %752 = vmatpush.bf16.msra.mxu3 %v1274_v23  ;;  %v1832_v52 = vpack.c.bf16 %v90_v49, %v90_v49  ;;  %v91_v55 = vld.sshfl [vmem:[#allocation1 + $0x18] sm:$0xff pattern:$0x73625140]  ;;  %v1834_v58 = vpack.c.bf16 %v88_v51, %v88_v51  ;;  %v89_v59 = vld.sshfl [vmem:[#allocation1 + $0x8] sm:$0xff pattern:$0x73625140] }
  0x32   :  { %726 = vmatpush.bf16.msra.mxu1 %v1146_v27  ;;  %v1187_v63 = vld [vmem:[#allocation5 + $0xe8] sm:$0xf0]  ;;  %v1369_v0 = vld [vmem:[#allocation5 + $0x250] sm:$0xf]  ;;  %v1604_v1 = vld [vmem:[#allocation5 + $0x254] sm:$0xf0]  ;;  %v1836_v4 = vpack.c.bf16 %v91_v55, %v91_v55  ;;  %v1838_v5 = vpack.c.bf16 %v89_v59, %v89_v59 }
  0x33   :  { %714 = vmatpush.bf16.msra.mxu0 %v1074_v34  ;;  %v1539_v2 = vld [vmem:[#allocation5 + $0x54] sm:$0xf]  ;;  %v1115_v3 = vld [vmem:[#allocation5 + $0x58] sm:$0xf0]  ;;  %v1190_v7 = vor.u32 %v1557_v62, %v1187_v63  ;;  %v1433_v8 = vld [vmem:[#allocation5 + $0x2d0] sm:$0xf]  ;;  %v1370_v10 = vor.u32 %v1604_v1, %v1369_v0 }
  0x34   :  { %740 = vmatpush.bf16.msra.mxu2 %v1202_v38  ;;  %v1620_v9 = vld [vmem:[#allocation5 + $0x2d4] sm:$0xf0]  ;;  %v1118_v11 = vor.u32 %v1539_v2, %v1115_v3  ;;  %v1555_v12 = vld [vmem:[#allocation5 + $0xd4] sm:$0xf]  ;;  %v1179_v13 = vld [vmem:[#allocation5 + $0xd8] sm:$0xf0] }
  0x35   :  { %753 = vmatpush.bf16.msra.mxu3 %v1266_v39  ;;  %v1361_v14 = vld [vmem:[#allocation5 + $0x240] sm:$0xf]  ;;  %v1602_v15 = vld [vmem:[#allocation5 + $0x244] sm:$0xf0]  ;;  %v1537_v16 = vld [vmem:[#allocation5 + $0x44] sm:$0xf]  ;;  %v1434_v18 = vor.u32 %v1620_v9, %v1433_v8  ;;  %v1182_v19 = vor.u32 %v1555_v12, %v1179_v13 }
  0x36   :  { %727 = vmatpush.bf16.msra.mxu1 %v1138_v48  ;;  %715 = vmatmul.bf16.vlgmr.msra.gmra.mxu0 %v1834_v58  ;;  %v1107_v17 = vld [vmem:[#allocation5 + $0x48] sm:$0xf0]  ;;  %v1425_v20 = vld [vmem:[#allocation5 + $0x2c0] sm:$0xf]  ;;  %v1618_v21 = vld [vmem:[#allocation5 + $0x2c4] sm:$0xf0]  ;;  %v1362_v22 = vor.u32 %v1602_v15, %v1361_v14 }
  0x37   :  { %759 = vmatpush.bf16.msrb.mxu0 %v1386_v43  ;;  %741 = vmatmul.bf16.vlgmr.msra.gmra.mxu2 %v1832_v52  ;;  %v1110_v23 = vor.u32 %v1537_v16, %v1107_v17  ;;  %v1553_v24 = vld [vmem:[#allocation5 + $0xc4] sm:$0xf]  ;;  %v1171_v25 = vld [vmem:[#allocation5 + $0xc8] sm:$0xf0]  ;;  %v1353_v26 = vld [vmem:[#allocation5 + $0x230] sm:$0xf]  ;;  %v1426_v30 = vor.u32 %v1618_v21, %v1425_v20 }
  0x38   :  { %792 = vmatpush.bf16.msrb.mxu2 %v1458_v50  ;;  %754 = vmatmul.bf16.vlgmr.msra.gmra.mxu3 %v1836_v4  ;;  %v1600_v27 = vld [vmem:[#allocation5 + $0x234] sm:$0xf0]  ;;  %v1535_v28 = vld [vmem:[#allocation5 + $0x34] sm:$0xf]  ;;  %v1099_v29 = vld [vmem:[#allocation5 + $0x38] sm:$0xf0]  ;;  %v1174_v32 = vor.u32 %v1553_v24, %v1171_v25 }
  0x39   :  { %798 = vmatpush.bf16.msrb.mxu3 %v1134_v44  ;;  %728 = vmatmul.bf16.vlgmr.msra.gmra.mxu1 %v1838_v5  ;;  %v1417_v31 = vld [vmem:[#allocation5 + $0x2b0] sm:$0xf]  ;;  %v1616_v33 = vld [vmem:[#allocation5 + $0x2b4] sm:$0xf0]  ;;  %v1551_v34 = vld [vmem:[#allocation5 + $0xb4] sm:$0xf]  ;;  %v1354_v36 = vor.u32 %v1600_v27, %v1353_v26  ;;  %v1102_v37 = vor.u32 %v1535_v28, %v1099_v29 }
  0x3a   :  { %772 = vmatpush.bf16.msrb.mxu1 %v1450_v53  ;;  %v82_v35 = vld [vmem:[#allocation2 + $0x8] sm:$0x3f]  ;;  %v1345_v39 = vld [vmem:[#allocation5 + $0x220] sm:$0xf]  ;;  %v1598_v40 = vld [vmem:[#allocation5 + $0x224] sm:$0xf0]  ;;  %v1418_v43 = vor.u32 %v1616_v33, %v1417_v31 }
  0x3b   :  { %760 = vmatpush.bf16.msrb.mxu0 %v1378_v60  ;;  %v1163_v38 = vld [vmem:[#allocation5 + $0xb8] sm:$0xf0]  ;;  %87 = vst [vmem:[#allocation1 + $0x20] ss:$4 sm:$0xff] %v82_v35  ;;  %v1533_v41 = vld [vmem:[#allocation5 + $0x24] sm:$0xf]  ;;  %v1346_v48 = vor.u32 %v1598_v40, %v1345_v39 }
  0x3c   :  { %811 = vmatpush.bf16.msra.mxu2 %v1198_v56  ;;  %v1091_v42 = vld [vmem:[#allocation5 + $0x28] sm:$0xf0]  ;;  %v1166_v44 = vor.u32 %v1551_v34, %v1163_v38  ;;  %v1409_v45 = vld [vmem:[#allocation5 + $0x2a0] sm:$0xf]  ;;  %v1614_v46 = vld [vmem:[#allocation5 + $0x2a4] sm:$0xf0] }
  0x3d   :  { %799 = vmatpush.bf16.msrb.mxu3 %v1126_v61  ;;  %v1549_v47 = vld [vmem:[#allocation5 + $0xa4] sm:$0xf]  ;;  %v1094_v49 = vor.u32 %v1533_v41, %v1091_v42  ;;  %v1155_v50 = vld [vmem:[#allocation5 + $0xa8] sm:$0xf0]  ;;  %v1337_v51 = vld [vmem:[#allocation5 + $0x210] sm:$0xf]  ;;  %v1410_v57 = vor.u32 %v1614_v46, %v1409_v45 }
  0x3e   :  { %773 = vmatpush.bf16.msrb.mxu1 %v1442_v6  ;;  %v1596_v53 = vld [vmem:[#allocation5 + $0x214] sm:$0xf0]  ;;  %v1531_v54 = vld [vmem:[#allocation5 + $0x14] sm:$0xf]  ;;  %v1083_v55 = vld [vmem:[#allocation5 + $0x18] sm:$0xf0]  ;;  %v1158_v62 = vor.u32 %v1549_v47, %v1155_v50 }
  0x3f   :  { %761 = vmatpush.bf16.msrb.mxu0 %v1370_v10  ;;  %v1401_v56 = vld [vmem:[#allocation5 + $0x290] sm:$0xf]  ;;  %v1612_v59 = vld [vmem:[#allocation5 + $0x294] sm:$0xf0]  ;;  %v1547_v60 = vld [vmem:[#allocation5 + $0x94] sm:$0xf]  ;;  %v1338_v1 = vor.u32 %v1596_v53, %v1337_v51  ;;  %v1086_v2 = vor.u32 %v1531_v54, %v1083_v55 }
  0x40   :  { %812 = vmatpush.bf16.msra.mxu2 %v1190_v7  ;;  %v1147_v61 = vld [vmem:[#allocation5 + $0x98] sm:$0xf0]  ;;  %v1329_v63 = vld [vmem:[#allocation5 + $0x200] sm:$0xf]  ;;  %v1594_v3 = vld [vmem:[#allocation5 + $0x204] sm:$0xf0]  ;;  %v1402_v12 = vor.u32 %v1612_v59, %v1401_v56 }
  0x41   :  { %800 = vmatpush.bf16.msrb.mxu3 %v1118_v11  ;;  %v1529_v7 = vld [vmem:[#allocation5 + $0x4] sm:$0xf]  ;;  %v1075_v8 = vld [vmem:[#allocation5 + $0x8] sm:$0xf0]  ;;  %v1575_v9 = vld [vmem:[#allocation5 + $0x174] sm:$0xf]  ;;  %v1150_v16 = vor.u32 %v1547_v60, %v1147_v61  ;;  %v1330_v20 = vor.u32 %v1594_v3, %v1329_v63 }
  0x42   :  { %774 = vmatpush.bf16.msrb.mxu1 %v1434_v18  ;;  %v94_v0 = vld.sshfl [vmem:[#allocation1 + $0x30] sm:$0xff pattern:$0x73625140]  ;;  %v1607_v11 = vld [vmem:[#allocation5 + $0x274] sm:$0xf]  ;;  %v1078_v21 = vor.u32 %v1529_v7, %v1075_v8  ;;  %s1789_s15 = smov [#allocation10]  }
  0x43   :  { %762 = vmatpush.bf16.msrb.mxu0 %v1362_v22  ;;  %v1844_v6 = vpack.c.bf16 %v94_v0, %v94_v0  ;;  %v1259_v10 = vld [vmem:[#allocation5 + $0x178] sm:$0xf0]  ;;  %v1393_v14 = vld [vmem:[#allocation5 + $0x280] sm:$0xf]  ;;  %v1610_v15 = vld [vmem:[#allocation5 + $0x284] sm:$0xf0] }
  0x44   :  { %813 = vmatpush.bf16.msra.mxu2 %v1182_v19  ;;  %v1387_v13 = vld [vmem:[#allocation5 + $0x278] sm:$0xf0]  ;;  %v1545_v17 = vld [vmem:[#allocation5 + $0x84] sm:$0xf]  ;;  %v1139_v18 = vld [vmem:[#allocation5 + $0x88] sm:$0xf0]  ;;  %v1262_v24 = vor.u32 %v1575_v9, %v1259_v10  ;;  %v1394_v29 = vor.u32 %v1610_v15, %v1393_v14 }
  0x45   :  { %801 = vmatpush.bf16.msrb.mxu3 %v1110_v23  ;;  %v1591_v19 = vld [vmem:[#allocation5 + $0x1f4] sm:$0xf]  ;;  %v92_v22 = vld.sshfl [vmem:[#allocation1 + $0x20] sm:$0xff pattern:$0x73625140]  ;;  %v1390_v25 = vor.u32 %v1607_v11, %v1387_v13  ;;  %v1142_v33 = vor.u32 %v1545_v17, %v1139_v18  ;;  %s1057_s16 = sshll.u32 %s1789_s15, 4  ;;  %s1058_s16 = int_to_ptr.vmem [resolvable:$true] %s1057_s16 }
  0x46   :  { %775 = vmatpush.bf16.msrb.mxu1 %v1426_v30  ;;  %v1323_v23 = vld [vmem:[#allocation5 + $0x1f8] sm:$0xf0]  ;;  %v1623_v26 = vld [vmem:[#allocation5 + $0x2f4] sm:$0xf]  ;;  %v1573_v28 = vld [vmem:[#allocation5 + $0x164] sm:$0xf] }
  0x47   :  { %763 = vmatpush.bf16.msrb.mxu0 %v1354_v36  ;;  %1463 = vmatmul.msk.bf16.vlgmr.msrb.gmra.mxu2 %vm703_vm0, %v1844_v6  ;;  %v1451_v27 = vld [vmem:[#allocation5 + $0x2f8] sm:$0xf0]  ;;  %v93_v30 = vld.sshfl [vmem:[#allocation1 + $0x28] sm:$0xff pattern:$0x73625140]  ;;  %v1326_v36 = vor.u32 %v1591_v19, %v1323_v23  ;;  %s1059_s19 = sshll.u32 %s1873_s5, 4  ;;  %s1060_s19 = int_to_ptr.hbm [resolvable:$true] %s1059_s19 }
  0x48   :  { %814 = vmatpush.bf16.msra.mxu2 %v1174_v32  ;;  %v1251_v31 = vld [vmem:[#allocation5 + $0x168] sm:$0xf0]  ;;  %v1848_v32 = vpack.c.bf16 %v92_v22, %v92_v22  ;;  %v1605_v34 = vld [vmem:[#allocation5 + $0x264] sm:$0xf]  ;;  %v1850_v39 = vpack.c.bf16 %v93_v30, %v93_v30  ;;  %v1571_v45 = vld [vmem:[#allocation5 + $0x154] sm:$0xf] }
  0x49   :  { %802 = vmatpush.bf16.msrb.mxu3 %v1102_v37  ;;  %v1379_v35 = vld [vmem:[#allocation5 + $0x268] sm:$0xf0]  ;;  %v1454_v37 = vor.u32 %v1623_v26, %v1451_v27  ;;  %v1589_v38 = vld [vmem:[#allocation5 + $0x1e4] sm:$0xf]  ;;  %v1254_v40 = vor.u32 %v1573_v28, %v1251_v31  ;;  %v1243_v46 = vld [vmem:[#allocation5 + $0x158] sm:$0xf0] }
  0x4a   :  { %776 = vmatpush.bf16.msrb.mxu1 %v1418_v43  ;;  %v1315_v41 = vld [vmem:[#allocation5 + $0x1e8] sm:$0xf0]  ;;  %v1621_v42 = vld [vmem:[#allocation5 + $0x2e4] sm:$0xf]  ;;  %v1603_v47 = vld [vmem:[#allocation5 + $0x254] sm:$0xf]  ;;  %v1246_v53 = vor.u32 %v1571_v45, %v1243_v46 }
  0x4b   :  { %764 = vmatpush.bf16.msrb.mxu0 %v1346_v48  ;;  %v1443_v43 = vld [vmem:[#allocation5 + $0x2e8] sm:$0xf0]  ;;  %v1371_v48 = vld [vmem:[#allocation5 + $0x258] sm:$0xf0]  ;;  %v1587_v51 = vld [vmem:[#allocation5 + $0x1d4] sm:$0xf] }
  0x4c   :  { %815 = vmatpush.bf16.msra.mxu2 %v1166_v44  ;;  %v1382_v44 = vor.u32 %v1605_v34, %v1379_v35  ;;  %v1446_v50 = vor.u32 %v1621_v42, %v1443_v43  ;;  %v1307_v54 = vld [vmem:[#allocation5 + $0x1d8] sm:$0xf0]  ;;  %v1619_v55 = vld [vmem:[#allocation5 + $0x2d4] sm:$0xf]  ;;  %v1569_v59 = vld [vmem:[#allocation5 + $0x144] sm:$0xf] }
  0x4d   :  { %803 = vmatpush.bf16.msrb.mxu3 %v1094_v49  ;;  %v1318_v49 = vor.u32 %v1589_v38, %v1315_v41  ;;  %v1435_v56 = vld [vmem:[#allocation5 + $0x2d8] sm:$0xf0]  ;;  %v1235_v60 = vld [vmem:[#allocation5 + $0x148] sm:$0xf0]  ;;  %v1601_v61 = vld [vmem:[#allocation5 + $0x244] sm:$0xf]  ;;  %v1310_v63 = vor.u32 %v1587_v51, %v1307_v54 }
  0x4e   :  { %777 = vmatpush.bf16.msrb.mxu1 %v1410_v57  ;;  %v1374_v57 = vor.u32 %v1603_v47, %v1371_v48  ;;  %v1438_v0 = vor.u32 %v1619_v55, %v1435_v56  ;;  %v1238_v3 = vor.u32 %v1569_v59, %v1235_v60  ;;  %v1617_v7 = vld [vmem:[#allocation5 + $0x2c4] sm:$0xf]  ;;  %v1427_v8 = vld [vmem:[#allocation5 + $0x2c8] sm:$0xf0]  ;;  %v1567_v10 = vld [vmem:[#allocation5 + $0x134] sm:$0xf] }
  0x4f   :  { %765 = vmatpush.bf16.msrb.mxu0 %v1338_v1  ;;  %v1585_v1 = vld [vmem:[#allocation5 + $0x1c4] sm:$0xf]  ;;  %v1227_v11 = vld [vmem:[#allocation5 + $0x138] sm:$0xf0]  ;;  %v1430_v14 = vor.u32 %v1617_v7, %v1427_v8  ;;  %v1583_v15 = vld [vmem:[#allocation5 + $0x1b4] sm:$0xf] }
  0x50   :  { %816 = vmatpush.bf16.msra.mxu2 %v1158_v62  ;;  %v1363_v62 = vld [vmem:[#allocation5 + $0x248] sm:$0xf0]  ;;  %v1355_v13 = vld [vmem:[#allocation5 + $0x238] sm:$0xf0]  ;;  %v1615_v18 = vld [vmem:[#allocation5 + $0x2b4] sm:$0xf] }
  0x51   :  { %804 = vmatpush.bf16.msrb.mxu3 %v1086_v2  ;;  %v1299_v2 = vld [vmem:[#allocation5 + $0x1c8] sm:$0xf0]  ;;  %v1366_v9 = vor.u32 %v1601_v61, %v1363_v62  ;;  %v1291_v17 = vld [vmem:[#allocation5 + $0x1b8] sm:$0xf0]  ;;  %v1597_v23 = vld [vmem:[#allocation5 + $0x224] sm:$0xf] }
  0x52   :  { %778 = vmatpush.bf16.msrb.mxu1 %v1402_v12  ;;  %v1599_v12 = vld [vmem:[#allocation5 + $0x234] sm:$0xf]  ;;  %v1419_v19 = vld [vmem:[#allocation5 + $0x2b8] sm:$0xf0]  ;;  %v1219_v22 = vld [vmem:[#allocation5 + $0x128] sm:$0xf0] }
  0x53   :  { %766 = vmatpush.bf16.msrb.mxu0 %v1330_v20  ;;  %v1358_v20 = vor.u32 %v1599_v12, %v1355_v13  ;;  %v1581_v26 = vld [vmem:[#allocation5 + $0x1a4] sm:$0xf]  ;;  %v1283_v28 = vld [vmem:[#allocation5 + $0x1a8] sm:$0xf0]  ;;  %v1211_v34 = vld [vmem:[#allocation5 + $0x118] sm:$0xf0] }
  0x54   :  { %817 = vmatpush.bf16.msra.mxu2 %v1150_v16  ;;  %v1230_v16 = vor.u32 %v1567_v10, %v1227_v11  ;;  %v1411_v30 = vld [vmem:[#allocation5 + $0x2a8] sm:$0xf0]  ;;  %v1595_v35 = vld [vmem:[#allocation5 + $0x214] sm:$0xf]  ;;  %v1275_v42 = vld [vmem:[#allocation5 + $0x198] sm:$0xf0] }
  0x55   :  { %805 = vmatpush.bf16.msrb.mxu3 %v1078_v21  ;;  %v1565_v21 = vld [vmem:[#allocation5 + $0x124] sm:$0xf]  ;;  %v1611_v43 = vld [vmem:[#allocation5 + $0x294] sm:$0xf]  ;;  %v1203_v47 = vld [vmem:[#allocation5 + $0x108] sm:$0xf0] }
  0x56   :  { %779 = vmatpush.bf16.msrb.mxu1 %v1394_v29  ;;  %767 = vmatmul.bf16.vlgmr.msrb.gmra.mxu0 %v1848_v32  ;;  %v1222_v27 = vor.u32 %v1565_v21, %v1219_v22  ;;  %v1613_v29 = vld [vmem:[#allocation5 + $0x2a4] sm:$0xf]  ;;  %v1459_v51 = vld [vmem:[#allocation5 + $0x308] sm:$0xf0]  ;;  %v1631_v7 = vld [vmem:[#allocation8 + $0x20] sm:$0xff] }
  0x57   :  { %824 = vmatpush.bf16.msra.mxu0 %v1262_v24  ;;  %v1294_v24 = vor.u32 %v1583_v15, %v1291_v17  ;;  %v1414_v38 = vor.u32 %v1613_v29, %v1411_v30  ;;  %v1561_v46 = vld [vmem:[#allocation5 + $0x104] sm:$0xf]  ;;  %v1395_v61 = vld [vmem:[#allocation5 + $0x288] sm:$0xf0]  ;;  %v1640_v21 = vld [vmem:[#allocation8 + $0x68] sm:$0xff] }
  0x58   :  { %818 = vmatpush.bf16.msra.mxu2 %v1142_v33  ;;  %806 = vmatmul.bf16.vlgmr.msrb.gmra.mxu3 %v1834_v58  ;;  %v1302_v58 = vor.u32 %v1585_v1, %v1299_v2  ;;  %v1563_v33 = vld [vmem:[#allocation5 + $0x114] sm:$0xf]  ;;  %v1593_v48 = vld [vmem:[#allocation5 + $0x204] sm:$0xf]  ;;  %v1206_v55 = vor.u32 %v1561_v46, %v1203_v47  ;;  %v1634_v1 = vld [vmem:[#allocation8 + $0x38] sm:$0xff] }
  0x59   :  { %850 = vmatpush.bf16.msra.mxu3 %v1390_v25  ;;  %780 = vmatmul.bf16.vlgmr.msrb.gmra.mxu1 %v1850_v39  ;;  %v1422_v25 = vor.u32 %v1615_v18, %v1419_v19  ;;  %v1214_v41 = vor.u32 %v1563_v33, %v1211_v34  ;;  %v1577_v56 = vld [vmem:[#allocation5 + $0x184] sm:$0xf]  ;;  %v1630_v8 = vld [vmem:[#allocation8 + $0x18] sm:$0xff] }
  0x5a   :  { %837 = vmatpush.bf16.msra.mxu1 %v1326_v36  ;;  %v1339_v36 = vld [vmem:[#allocation5 + $0x218] sm:$0xf0]  ;;  %v1609_v60 = vld [vmem:[#allocation5 + $0x284] sm:$0xf] }
  0x5b   :  { %825 = vmatpush.bf16.msra.mxu0 %v1254_v40  ;;  %819 = vmatmul.bf16.vlgmr.msra.gmra.mxu2 %v1838_v5  ;;  %v1347_v5 = vld [vmem:[#allocation5 + $0x228] sm:$0xf0]  ;;  %v1579_v40 = vld [vmem:[#allocation5 + $0x194] sm:$0xf]  ;;  %v1342_v45 = vor.u32 %v1595_v35, %v1339_v36  ;;  %v1633_v2 = vld [vmem:[#allocation8 + $0x30] sm:$0xff] }
  0x5c   :  { %863 = vmatpush.bf16.msrb.mxu2 %v1454_v37  ;;  %v1350_v31 = vor.u32 %v1597_v23, %v1347_v5  ;;  %v1286_v37 = vor.u32 %v1581_v26, %v1283_v28  ;;  %v1638_v28 = vld [vmem:[#allocation8 + $0x58] sm:$0xff]  ;;  %v1637_v34 = vld [vmem:[#allocation8 + $0x50] sm:$0xff] }
  0x5d   :  { %851 = vmatpush.bf16.msra.mxu3 %v1382_v44  ;;  %v1403_v44 = vld [vmem:[#allocation5 + $0x298] sm:$0xf0] }
  0x5e   :  { %838 = vmatpush.bf16.msra.mxu1 %v1318_v49  ;;  %v1331_v49 = vld [vmem:[#allocation5 + $0x208] sm:$0xf0]  ;;  %v1406_v54 = vor.u32 %v1611_v43, %v1403_v44 }
  0x5f   :  { %826 = vmatpush.bf16.msra.mxu0 %v1246_v53  ;;  %v1278_v53 = vor.u32 %v1579_v40, %v1275_v42  ;;  %v1334_v59 = vor.u32 %v1593_v48, %v1331_v49 }
  0x60   :  { %864 = vmatpush.bf16.msrb.mxu2 %v1446_v50  ;;  %v1625_v50 = vld [vmem:[#allocation5 + $0x304] sm:$0xf] }
  0x61   :  { %852 = vmatpush.bf16.msra.mxu3 %v1374_v57  ;;  %v1267_v57 = vld [vmem:[#allocation5 + $0x188] sm:$0xf0]  ;;  %v1462_v62 = vor.u32 %v1625_v50, %v1459_v51 }
  0x62   :  { %839 = vmatpush.bf16.msra.mxu1 %v1310_v63  ;;  %v1270_v63 = vor.u32 %v1577_v56, %v1267_v57 }
  0x63   :  { %827 = vmatpush.bf16.msra.mxu0 %v1238_v3  ;;  %v1632_v3 = vld [vmem:[#allocation8 + $0x28] sm:$0xff] }
  0x64   :  { %865 = vmatpush.bf16.msrb.mxu2 %v1438_v0  ;;  %v1398_v0 = vor.u32 %v1609_v60, %v1395_v61 }
  0x65   :  { %853 = vmatpush.bf16.msra.mxu3 %v1366_v9 }
  0x66   :  { %840 = vmatpush.bf16.msra.mxu1 %v1302_v58  ;;  %v1642_v58 = vld [vmem:[#allocation8 + $0x78] sm:$0xff] }
  0x67   :  { %828 = vmatpush.bf16.msra.mxu0 %v1230_v16  ;;  %v1641_v16 = vld [vmem:[#allocation8 + $0x70] sm:$0xff] }
  0x68   :  { %866 = vmatpush.bf16.msrb.mxu2 %v1430_v14 }
  0x69   :  { %854 = vmatpush.bf16.msra.mxu3 %v1358_v20 }
  0x6a   :  { %841 = vmatpush.bf16.msra.mxu1 %v1294_v24  ;;  %v1639_v24 = vld [vmem:[#allocation8 + $0x60] sm:$0xff] }
  0x6b   :  { %829 = vmatpush.bf16.msra.mxu0 %v1222_v27 }
  0x6c   :  { %867 = vmatpush.bf16.msrb.mxu2 %v1422_v25 }
  0x6d   :  { %855 = vmatpush.bf16.msra.mxu3 %v1350_v31 }
  0x6e   :  { %842 = vmatpush.bf16.msra.mxu1 %v1286_v37 }
  0x6f   :  { %830 = vmatpush.bf16.msra.mxu0 %v1214_v41  ;;  %v1635_v41 = vld [vmem:[#allocation8 + $0x40] sm:$0xff] }
  0x70   :  { %868 = vmatpush.bf16.msrb.mxu2 %v1414_v38  ;;  %v1636_v38 = vld [vmem:[#allocation8 + $0x48] sm:$0xff] }
  0x71   :  { %856 = vmatpush.bf16.msra.mxu3 %v1342_v45 }
  0x72   :  { %843 = vmatpush.bf16.msra.mxu1 %v1278_v53 }
  0x73   :  { %831 = vmatpush.bf16.msra.mxu0 %v1206_v55 }
  0x74   :  { %869 = vmatpush.bf16.msrb.mxu2 %v1406_v54 }
  0x75   :  { %857 = vmatpush.bf16.msra.mxu3 %v1334_v59 }
  0x76   :  { %844 = vmatpush.bf16.msra.mxu1 %v1270_v63  ;;  %832 = vmatmul.bf16.vlgmr.msra.gmra.mxu0 %v1832_v52  ;;  %v1629_v52 = vld [vmem:[#allocation8 + $0x10] sm:$0xff] }
  0x77   :  { %883 = vmatpush.bf16.msrb.mxu0 %v1462_v62 }
  0x78   :  { %858 = vmatmul.bf16.vlgmr.msra.gmra.mxu3 %v1848_v32  ;;  %870 = vmatpush.bf16.msrb.mxu2 %v1398_v0  ;;  %v1628_v32 = vld [vmem:[#allocation8 + $0x8] sm:$0xff] }
  0x79   :  { %845 = vmatmul.bf16.vlgmr.msra.gmra.mxu1 %v1836_v4  ;;  %1038 = vmatpush.bf16.msrb.mxu3 %v1642_v58 }
  0x7a   :  { %1025 = vmatpush.bf16.msrb.mxu1 %v1634_v1 }
  0x7b   :  { %871 = vmatmul.bf16.vlgmr.msrb.gmra.mxu2 %v1850_v39  ;;  %v1627_v39 = vld [vmem:[#allocation8] sm:$0xff] }
  0x7d   :  { %1039 = vmatpush.bf16.msrb.mxu3 %v1641_v16 }
  0x7e   :  { %1026 = vmatpush.bf16.msrb.mxu1 %v1633_v2 }
  0x81   :  { %1040 = vmatpush.bf16.msrb.mxu3 %v1640_v21 }
  0x82   :  { %1027 = vmatpush.bf16.msrb.mxu1 %v1632_v3 }
  0x85   :  { %1041 = vmatpush.bf16.msrb.mxu3 %v1639_v24 }
  0x86   :  { %1464 = vmatmul.msk.bf16.vlgmr.msrb.gmra.mxu0 %vm703_vm0, %v1844_v6  ;;  %1028 = vmatpush.bf16.msrb.mxu1 %v1631_v7  ;;  %v207_v6 = vld [vmem:[#allocation7] sm:$0x3]  ;;  %v1652_v7 = vld [vmem:[%s1872_s4] ss:$0 sm:$0xff] }
  0x87   :  { %v209_v14 = vperm.slane %v207_v6, 0  ;;  %v210_v44 = vperm.slane %v207_v6, 1 }
  0x89   :  { %1042 = vmatpush.bf16.msrb.mxu3 %v1638_v28 }
  0x8a   :  { %1029 = vmatpush.bf16.msrb.mxu1 %v1630_v8 }
  0x8d   :  { %1043 = vmatpush.bf16.msrb.mxu3 %v1637_v34 }
  0x8e   :  { %1030 = vmatpush.bf16.msrb.mxu1 %v1629_v52 }
  0x91   :  { %1044 = vmatpush.bf16.msrb.mxu3 %v1636_v38 }
  0x92   :  { %1031 = vmatpush.bf16.msrb.mxu1 %v1628_v32 }
  0x95   :  { %1045 = vmatpush.bf16.msrb.mxu3 %v1635_v41 }
  0x96   :  { %1032 = vmatpush.bf16.msrb.mxu1 %v1627_v39 }
  0xb3   :  { %v716_v9 = vpop.f32.mrf.mxu0 }
  0xb4   :  { %v717_v17 = vadd.f32 %v716_v9, %v209_v14 }
  0xb6   :  { %v729_v4 = vpop.f32.mrf.mxu1 }
  0xb7   :  { %v730_v19 = vadd.f32 %v729_v4, %v717_v17 }
  0xba   :  { %v742_v10 = vpop.f32.mrf.mxu2 }
  0xbb   :  { %v755_v11 = vpop.f32.mrf.mxu3  ;;  %v718_v12 = vpop.f32.mrf.mxu0  ;;  %v743_v20 = vadd.f32 %v742_v10, %v730_v19 }
  0xbd   :  { %v756_v23 = vadd.f32 %v755_v11, %v743_v20 }
  0xbe   :  { %v731_v13 = vpop.f32.mrf.mxu1 }
  0xc2   :  { %v744_v15 = vpop.f32.mrf.mxu2 }
  0xc3   :  { %v757_v18 = vpop.f32.mrf.mxu3 }
  0xca   :  { %v794_v22 = vpop.f32.mrf.mxu2 }
  0xd2   :  { %v796_v30 = vpop.f32.mrf.mxu2 }
  0xd3   :  { %v768_v5 = vpop.f32.mrf.mxu0 }
  0xd4   :  { %v769_v25 = vadd.f32 %v768_v5, %v756_v23 }
  0xd6   :  { %v781_v26 = vpop.f32.mrf.mxu1 }
  0xd7   :  { %v782_v27 = vadd.f32 %v781_v26, %v769_v25 }
  0xd9   :  { %v795_v29 = vadd.f32 %v794_v22, %v782_v27 }
  0xdb   :  { %v889_v31 = vmax.f32 %v795_v29, 0.0  ;;  %v770_v33 = vpop.f32.mrf.mxu0  ;;  %v807_v36 = vpop.f32.mrf.mxu3 }
  0xdc   :  { %v808_v45 = vadd.f32 %v807_v36, %v210_v44 }
  0xdd   :  { %v891_v35 = vpack.c.bf16 %v889_v31, %v889_v31 }
  0xde   :  { %v783_v37 = vpop.f32.mrf.mxu1  ;;  %v820_v40 = vpop.f32.mrf.mxu2 }
  0xdf   :  { %1033 = vmatmul.bf16.vlgmr.msrb.gmra.mxu1 %v891_v35  ;;  %v821_v47 = vadd.f32 %v820_v40, %v808_v45 }
  0xe3   :  { %v809_v42 = vpop.f32.mrf.mxu3 }
  0xe6   :  { %v822_v43 = vpop.f32.mrf.mxu2 }
  0xf3   :  { %v833_v46 = vpop.f32.mrf.mxu0 }
  0xf4   :  { %v834_v49 = vadd.f32 %v833_v46, %v821_v47 }
  0xf6   :  { %v846_v48 = vpop.f32.mrf.mxu1 }
  0xf7   :  { %v847_v53 = vadd.f32 %v846_v48, %v834_v49 }
  0xfb   :  { %v859_v50 = vpop.f32.mrf.mxu3  ;;  %v835_v51 = vpop.f32.mrf.mxu0 }
  0xfc   :  { %v860_v55 = vadd.f32 %v859_v50, %v847_v53 }
  0xfe   :  { %v872_v54 = vpop.f32.mrf.mxu2  ;;  %v848_v56 = vpop.f32.mrf.mxu1 }
  0xff   :  { %v873_v57 = vadd.f32 %v872_v54, %v860_v55 }
 0x103   :  { %v861_v59 = vpop.f32.mrf.mxu3  ;;  %v885_v60 = vpop.f32.mrf.mxu0 }
 0x104   :  { %v886_v61 = vadd.f32 %v885_v60, %v873_v57 }
 0x106   :  { %v874_v62 = vpop.f32.mrf.mxu2  ;;  %v890_v63 = vmax.f32 %v886_v61, 0.0 }
 0x108   :  { %v892_v0 = vpack.c.bf16 %v890_v63, %v890_v63 }
 0x10a   :  { %1046 = vmatmul.bf16.vlgmr.msrb.gmra.mxu3 %v892_v0 }
 0x10b   :  { %v887_v1 = vpop.f32.mrf.mxu0 }
 0x15c   :  { %v1034_v2 = vpop.f32.mrf.mxu1 }
 0x15d   :  { %v1035_v8 = vadd.f32 %v1652_v7, %v1034_v2 }
 0x164   :  { %v1036_v3 = vpop.f32.mrf.mxu1 }
 0x18d   :  { %v1047_v52 = vpop.f32.mrf.mxu3 }
 0x18e   :  { %v1048_v32 = vadd.f32 %v1047_v52, %v1035_v8 }
 0x190   :  { %1051 = vst [vmem:[#allocation10] sm:$0x3] %v1048_v32 }
 0x191   :  { %1062 = dma.vmem_to_hbm [thread:$0]  %s1058_s16, 32, %s1060_s19, [#allocation4]  }
 0x195   :  { %v1049_v9 = vpop.f32.mrf.mxu3 }
 0x196   :  { %1779 = dma.done.wait [#allocation4], 32  }
 0x197   :  { %1780 = vsyncadd [#allocation4], 4294967264 }
 0x198   :  { %1067 = vsyncpa [#allocation3], 1 }
 0x199   :  { %1068 = vsyncpa [#allocation6], 1 }
 0x19a   :  { %1069 = vsyncpa [#allocation9], 1 }
 0x19b   :  { %1070 = vsyncpa [#allocation4], 1 }

</bundles_post_ra>
